<compile_context>
chip_gen: v6e
topology: v6e:2x2x1
jax: 0.10.0
libtpu: 0.0.40
codegen_flags: <defaults>
</compile_context>

<pallas_src>
import numpy as np
import jax
import jax.numpy as jnp
from jax.experimental import pallas as pl
from jax.experimental.pallas import tpu as pltpu

_LANES = 128


# ------------------------------------------------------------------
# prepare_batch hot path: paste the permuted batch inside the cut box
# ------------------------------------------------------------------
def cutmix_prepare_batch(x, index, y1, x1, y2, x2):
    """x: (B, C, H, W). Returns x with x[index] pasted into the [y1:y2, x1:x2] box."""
    B, C, H, W = x.shape
    if y2 <= y1 or x2 <= x1:          # empty box -> the paste is a no-op
        return x
    P = C * H * W
    assert P % _LANES == 0, "C*H*W must be a multiple of 128 for the lane-dense layout"
    # TODO(synk): fall back to a (B, C*H, W) layout when C*H*W % 128 != 0.
    R = P // _LANES                   # rows per sample in the (B, R, 128) view

    itemsize = jnp.dtype(x.dtype).itemsize
    sub = {4: 8, 2: 16, 1: 32}.get(itemsize, 8)          # dtype-aware sublane multiple
    # ~36 MiB of double-buffered operands (3 image operands x2 buffers + int32 mask x2)
    # stays under the 48 MiB scoped limit and well inside v7x's 64 MiB physical VMEM.
    budget = 36 << 20
    denom = _LANES * (6 * itemsize + 2 * 4)
    max_rows = max(sub, (budget // denom) // sub * sub)
    row_blk = R if R <= max_rows else max_rows
    n_chunks = pl.cdiv(R, row_blk)

    xf = x.reshape(B, R, _LANES)
    index = index.astype(jnp.int32)

    # Static box -> precompute the (R, 128) "inside" mask once (hoisted out of the
    # kernel: no per-block div/mod/compare VALU work, no recompute across batch).
    p = jnp.arange(R * _LANES, dtype=jnp.int32).reshape(R, _LANES)
    hh = (p // W) % H
    ww = p % W
    inside = ((hh >= y1) & (hh < y2) & (ww >= x1) & (ww < x2)).astype(jnp.int32)

    def kernel(idx_ref, mask_ref, base_ref, donor_ref, o_ref):
        del idx_ref  # only consumed by the index_maps
        o_ref[...] = jnp.where(mask_ref[...] != 0, donor_ref[...], base_ref[...])

    grid_spec = pltpu.PrefetchScalarGridSpec(
        num_scalar_prefetch=1,
        grid=(n_chunks, B),           # chunk outer, batch inner: mask block stays resident
        in_specs=[
            pl.BlockSpec((row_blk, _LANES), lambda j, b, idx: (j, 0)),
            pl.BlockSpec((1, row_blk, _LANES), lambda j, b, idx: (b, j, 0)),
            pl.BlockSpec((1, row_blk, _LANES), lambda j, b, idx: (idx[b], j, 0)),
        ],
        out_specs=pl.BlockSpec((1, row_blk, _LANES), lambda j, b, idx: (b, j, 0)),
    )
    out = pl.pallas_call(
        kernel,
        grid_spec=grid_spec,
        out_shape=jax.ShapeDtypeStruct((B, R, _LANES), x.dtype),
        compiler_params=pltpu.CompilerParams(
            dimension_semantics=("parallel", "parallel"),
            vmem_limit_bytes=48 * 1024 * 1024,
        ),
        cost_estimate=pl.CostEstimate(
            flops=0, transcendentals=0,
            bytes_accessed=3 * B * P * itemsize + R * _LANES * 4),
    )(index, inside, xf, xf)
    return out.reshape(B, C, H, W)


# ------------------------------------------------------------------
# forward hot path: lamb * CE(pred, t) + (1 - lamb) * CE(pred, t[index]), mean-reduced
# ------------------------------------------------------------------
def cutmix_ce_forward(pred, target, target_perm, lamb, block_b=None):
    B, C = pred.shape
    # Large default block: with tiny blocks the per-grid-step overhead dominates.
    if block_b is None:
        block_b = 512
    block_b = max(block_b, 512)
    block_b = min(block_b, B)
    if block_b < B:
        block_b = max(8, (block_b // 8) * 8)
    n_blocks = pl.cdiv(B, block_b)
    ragged = (B % block_b) != 0

    # Merge the two target vectors into one (B, 2) int32 input: one tiny DMA per step.
    tt = jnp.stack([target.astype(jnp.int32), target_perm.astype(jnp.int32)], axis=1)
    lamb_arr = jnp.asarray([lamb], dtype=jnp.float32)
    inv_b = 1.0 / float(B)                       # divide by the GLOBAL batch size

    def kernel(lamb_ref, pred_ref, tt_ref, out_ref):
        pid = pl.program_id(0)

        @pl.when(pid == 0)
        def _():
            out_ref[...] = jnp.zeros_like(out_ref)

        logits = pred_ref[...].astype(jnp.float32)               # (blk, C) — unpadded
        m = jnp.max(logits, axis=-1, keepdims=True)
        lse = jnp.log(jnp.sum(jnp.exp(logits - m), axis=-1, keepdims=True)) + m
        cols = jax.lax.broadcasted_iota(jnp.int32, logits.shape, 1)
        t1 = tt_ref[:, 0:1]                                      # target[b]
        t2 = tt_ref[:, 1:2]                                      # target[index[b]]
        sel1 = jnp.sum(jnp.where(cols == t1, logits, 0.0), axis=-1, keepdims=True)
        sel2 = jnp.sum(jnp.where(cols == t2, logits, 0.0), axis=-1, keepdims=True)
        lamb_s = lamb_ref[0]
        per_sample = lamb_s * (lse - sel1) + (1.0 - lamb_s) * (lse - sel2)  # (blk, 1)
        if ragged:
            rows = jax.lax.broadcasted_iota(jnp.int32, per_sample.shape, 0)
            valid = (pid * block_b + rows) < B
            per_sample = jnp.where(valid, per_sample, 0.0)
        out_ref[...] += jnp.sum(per_sample, axis=0, keepdims=True)          # (1, 1) partial

        @pl.when(pid == pl.num_programs(0) - 1)
        def _():
            out_ref[...] = out_ref[...] * inv_b                  # reduce_loss(..., 'mean')

    out = pl.pallas_call(
        kernel,
        grid=(n_blocks,),
        out_shape=jax.ShapeDtypeStruct((1, 1), jnp.float32),
        in_specs=[
            pl.BlockSpec(memory_space=pltpu.SMEM),               # lamb scalar
            pl.BlockSpec((block_b, C), lambda i: (i, 0)),        # full class dim, no pad
            pl.BlockSpec((block_b, 2), lambda i: (i, 0)),
        ],
        out_specs=pl.BlockSpec((1, 1), lambda i: (0, 0)),
        compiler_params=pltpu.CompilerParams(
            dimension_semantics=("arbitrary",)),
        cost_estimate=pl.CostEstimate(
            flops=8 * B * C, transcendentals=B * C,
            bytes_accessed=(B * C + 2 * B + 1) * 4 + 4),
    )(lamb_arr, pred, tt)
    return out[0, 0]


if __name__ == "__main__":
    B, C, H, W = 16, 4, 16, 16
    NUM_CLASSES = 32
    alpha = 1.0

    key = jax.random.PRNGKey(0)
    kx, kp, kperm = jax.random.split(key, 3)
    x = jax.random.normal(kx, (B, C, H, W), jnp.float32)
    pred = jax.random.normal(kp, (B, NUM_CLASSES), jnp.float32)
    target = (jnp.arange(B, dtype=jnp.int32) * 3) % NUM_CLASSES

    # host-side RNG state of the module (self.rng / torch.randperm), made deterministic
    rng = np.random.default_rng(0)
    index = jax.random.permutation(kperm, B).astype(jnp.int32)

    # ---- prepare_batch (box computed on host exactly like _cut_bounding_box) ----
    lamb0 = rng.beta(alpha, alpha)
    cut_size_2 = 0.5 * np.sqrt(1.0 - lamb0)
    center_yx = rng.random(2)
    shape_hw = np.array([H, W], dtype=np.float64)
    y1x1 = (np.clip(center_yx - cut_size_2, 0.0, 1.0) * shape_hw).astype(int)
    y2x2 = (np.clip(center_yx + cut_size_2, 0.0, 1.0) * shape_hw).astype(int)
    y1, x1, y2, x2 = int(y1x1[0]), int(y1x1[1]), int(y2x2[0]), int(y2x2[1])

    x_mixed = cutmix_prepare_batch(x, index, y1, x1, y2, x2)
    lamb = 1.0 - (x2 - x1) * (y2 - y1) / float(H * W)   # recomputed lamb, as in the module

    # ---- forward ----
    target_perm = target[index]
    loss = cutmix_ce_forward(pred, target, target_perm, lamb)
    loss = jax.block_until_ready(loss)
    x_mixed = jax.block_until_ready(x_mixed)

    # ---- pure-JAX reference checks ----
    xp = x[index]
    x_expect = x.at[:, :, y1:y2, x1:x2].set(xp[:, :, y1:y2, x1:x2])
    assert np.allclose(np.asarray(x_mixed), np.asarray(x_expect)), "prepare_batch mismatch"

    logz = jax.nn.log_softmax(pred, axis=-1)
    ce1 = -logz[jnp.arange(B), target]
    ce2 = -logz[jnp.arange(B), target_perm]
    ref = jnp.mean(lamb * ce1 + (1.0 - lamb) * ce2)
    assert np.allclose(np.asarray(loss), np.asarray(ref), rtol=1e-5, atol=1e-5), "forward mismatch"

    print("KERNEL_OK")
</pallas_src>

<mosaic_0001>
module attributes {stable_mosaic.version = 11 : i64} {
  func.func @kernel(%arg0: i32, %arg1: i32, %arg2: memref<16xi32, #tpu.memory_space<smem>>, %arg3: memref<8x128xi32, #tpu.memory_space<vmem>>, %arg4: memref<1x8x128xf32, #tpu.memory_space<vmem>>, %arg5: memref<1x8x128xf32, #tpu.memory_space<vmem>>, %arg6: memref<1x8x128xf32, #tpu.memory_space<vmem>>) attributes {dimension_semantics = [#tpu.dimension_semantics<parallel>, #tpu.dimension_semantics<parallel>], iteration_bounds = array<i64: 1, 16>, scalar_prefetch = 1 : i64, scratch_operands = 0 : i64, tpu.core_type = #tpu.core_type<tc>, window_params = [{transform_indices = @transform_0, window_bounds = array<i64: 8, 128>}, {transform_indices = @transform_1, window_bounds = array<i64: 1, 8, 128>}, {transform_indices = @transform_2, window_bounds = array<i64: 1, 8, 128>}, {transform_indices = @transform_3, window_bounds = array<i64: 1, 8, 128>}]} {
    %c0 = arith.constant 0 : index
    %c0_0 = arith.constant 0 : index
    %0 = vector.load %arg3[%c0, %c0_0] : memref<8x128xi32, #tpu.memory_space<vmem>>, vector<8x128xi32>
    %c0_i32 = arith.constant 0 : i32
    %1 = vector.broadcast %c0_i32 : i32 to vector<8x128xi32>
    %2 = arith.cmpi ne, %0, %1 : vector<8x128xi32>
    %c0_1 = arith.constant 0 : index
    %c0_2 = arith.constant 0 : index
    %c0_3 = arith.constant 0 : index
    %3 = vector.load %arg5[%c0_1, %c0_2, %c0_3] : memref<1x8x128xf32, #tpu.memory_space<vmem>>, vector<1x8x128xf32>
    %c0_4 = arith.constant 0 : index
    %c0_5 = arith.constant 0 : index
    %c0_6 = arith.constant 0 : index
    %4 = vector.load %arg4[%c0_4, %c0_5, %c0_6] : memref<1x8x128xf32, #tpu.memory_space<vmem>>, vector<1x8x128xf32>
    %5 = vector.shape_cast %2 : vector<8x128xi1> to vector<1x8x128xi1>
    %6 = arith.select %5, %3, %4 : vector<1x8x128xi1>, vector<1x8x128xf32>
    %c0_7 = arith.constant 0 : index
    %c0_8 = arith.constant 0 : index
    %c0_9 = arith.constant 0 : index
    %7 = vector.load %arg6[%c0_7, %c0_8, %c0_9] : memref<1x8x128xf32, #tpu.memory_space<vmem>>, vector<1x8x128xf32>
    tpu.vector_store %arg6[%c0_7, %c0_8, %c0_9], %6 {strides = array<i32>} : memref<1x8x128xf32, #tpu.memory_space<vmem>>, vector<1x8x128xf32>,
    return
  }
  func.func @transform_0(%arg0: i32, %arg1: i32, %arg2: memref<16xi32, #tpu.memory_space<smem>>) -> (i32, i32) {
    %c0_i32 = arith.constant 0 : i32
    %c0_i32_0 = arith.constant 0 : i32
    return %arg0, %c0_i32 : i32, i32
  }
  func.func @transform_1(%arg0: i32, %arg1: i32, %arg2: memref<16xi32, #tpu.memory_space<smem>>) -> (i32, i32, i32) {
    %c0_i32 = arith.constant 0 : i32
    %c0_i32_0 = arith.constant 0 : i32
    return %arg1, %arg0, %c0_i32 : i32, i32, i32
  }
  func.func @transform_2(%arg0: i32, %arg1: i32, %arg2: memref<16xi32, #tpu.memory_space<smem>>) -> (i32, i32, i32) {
    %0 = arith.index_cast %arg1 : i32 to index
    %1 = memref.load %arg2[%0] : memref<16xi32, #tpu.memory_space<smem>>
    %c0_i32 = arith.constant 0 : i32
    %c0_i32_0 = arith.constant 0 : i32
    return %1, %arg0, %c0_i32 : i32, i32, i32
  }
  func.func @transform_3(%arg0: i32, %arg1: i32, %arg2: memref<16xi32, #tpu.memory_space<smem>>) -> (i32, i32, i32) {
    %c0_i32 = arith.constant 0 : i32
    %c0_i32_0 = arith.constant 0 : i32
    return %arg1, %arg0, %c0_i32 : i32, i32, i32
  }
}

</mosaic_0001>

<bundles_post_ra>
// kernel: tpu_custom_call.1
= control target key start
LH: loop header
LB: loop body
LE: loop exit
PB: predicated region body
PF: predicated region fallthrough
CT: control target
= control target key end

     0   :  { %s736_s15 = smov [#allocation3]   ;;  %s1032_s0 = inlined_call_operand.hbm [shape: s32[16], index: 0, kind: input, shape index: {}]   ;;  %s1033_s1 = inlined_call_operand.hbm [shape: s32[8,128], index: 1, kind: input, shape index: {}]   ;;  %s1034_s2 = inlined_call_operand.hbm [shape: f32[16,8,128], index: 2, kind: input, shape index: {}]   ;;  %s1035_s3 = inlined_call_operand.hbm [shape: f32[16,8,128], index: 3, kind: input, shape index: {}]   ;;  %s1036_s4 = inlined_call_operand.hbm [shape: f32[16,8,128], index: 4, kind: output, shape index: {}]  }
   0x1   :  { %1047 = sst [smem:[#allocation23_spill]] %s1033_s1 }
   0x2   :  { %1048 = sst [smem:[#allocation24_spill]] %s1034_s2 }
   0x3   :  { %10 = dma.hbm_to_smem %s1032_s0, 16, %s736_s15, [#allocation2] }
   0x4   :  { %682 = dma.done.wait [#allocation2], 16 }
   0x5   :  { %683 = vsyncadd [#allocation2], 4294967280 }
   0x6   :  { %12 = sfence }
   0x7   :  { %13 = vsyncpa [#allocation5], 0 }
   0x8   :  { %14 = vsyncpa [#allocation8], 0 }
   0x9   :  { %16 = vsyncpa [#allocation8 + $0x1], 0 }
   0xa   :  { %17 = vsyncpa [#allocation6], 0 }
   0xb   :  { %19 = vsyncpa [#allocation6 + $0x1], 0  ;;  %s769_s18 = smov 0   ;;  %s771_s19 = smov 0  }
   0xc   :  { %s773_s20 = smov 0   ;;  %s775_s21 = smov 0  }
   0xd   :  { %s777_s22 = smov 0   ;;  %s779_s23 = smov 0  }
   0xe   :  { %s781_s0 = smov 0   ;;  %s783_s24 = smov 0  }
   0xf   :  { %s785_s25 = smov 0  }
  0x10 LB: > { %1049 = sst [smem:[#allocation18_spill]] %s722_s23  ;;  %s34_s26 = sadd.s32 1, %s730_s24  ;;  %s734_s25 = sphi %s785_s25, %s25_s25   ;;  %s730_s24 = sphi %s783_s24, %s1081_s24   ;;  %s726_s0 = sphi %s781_s0, %s1080_s0   ;;  %s722_s23 = sphi %s779_s23, %s1079_s23   ;;  %s718_s22 = sphi %s777_s22, %s1086_s22   ;;  %s714_s21 = sphi %s775_s21, %s1085_s21   ;;  %s710_s20 = sphi %s773_s20, %s1084_s20   ;;  %s706_s19 = sphi %s771_s19, %s1083_s19   ;;  %s702_s18 = sphi %s769_s18, %s1082_s18  }
  0x11   : > { %1050 = sst [smem:[#allocation19_spill]] %s730_s24  ;;  %s72_s27 = sadd.s32 1, %s722_s23 }
  0x12   : > { %p35_p0 = scmp.ge.s32.totalorder %s34_s26, 16  ;;  %p79_p1 = scmp.ne.s32.totalorder %s722_s23, %s718_s22 }
  0x13   : > { %p1038_p2 = scmp.eq.s32.totalorder %s734_s25, 0  ;;  %s820_s28 = sld [smem:[#allocation3 + %s730_s24]] }
  0x14   : > { %s1088_s26 = smov (%p35_p0, %s34_s26), 0  ;;  %p1037_p5 = scmp.lt.s32.totalorder %s734_s25, 16 }
  0x15   : > { %1051 = sst [smem:[#allocation20_spill]] %s1088_s26  ;;  %p829_p3 = por %p1038_p2, %p79_p1 }
  0x16   : > { %s67_s30 = ssub.s32 %s730_s24, %s1088_s26  ;;  %s836_s5 = sld [smem:[#allocation3 + %s1088_s26]] }
  0x17   : > { %p70_p4 = scmp.eq.s32.totalorder %s67_s30, 0  ;;  %s180_s6 = sand.u32 1, %s734_s25  }
  0x18   : > { %s182_s7 = sand.u32 1, %s722_s23   ;;  %s411_s10 = sshll.u32 %s730_s24, 7 }
  0x19   : > { %s842_s8 = scalar_select %p70_p4, %s722_s23, %s72_s27  }
  0x1a   : > { %s410_s9 = sshll.u32 %s182_s7, 3  ;;  %s1054_s2 = sld [smem:[#allocation24_spill]] }
  0x1b   : > { %1053 = sst [smem:[#allocation21_spill]] %s842_s8  ;;  %s184_s14 = scalar_lea.vmem [#allocation7], %s410_s9 }
  0x1c   : > { %s192_s15 = sshll.u32 %s184_s14, 4  ;;  %p852_p6 = pnand %p1037_p5, %p829_p3  ;;  %s193_s15 = int_to_ptr.vmem [resolvable:$true] %s192_s15 }
  0x1d   : > { %s856_s17 = scalar_lea.sflag [#allocation8], %s180_s6  ;;  %s551_s27 = scalar_lea.vmem %s193_s15, 128 }
  0x1e   : > { %p540_p7 = pneg %p852_p6  ;;  %p552_p8 = scmp.ne.s32.totalorder %s193_s15, %s551_s27 }
  0x1f   : > { %s737_s30 = smov [#allocation7]  }
  0x20   : > { %s190_s13 = scalar_lea.hbm %s1054_s2, %s411_s10  ;;  %p554_p9 = pnand %p552_p8, %p540_p7 }
  0x21   : > { %s556_s7 = sshll.u32 %s737_s30, 4  ;;  %s557_s7 = int_to_ptr.vmem [resolvable:$false] %s556_s7 }
  0x22   : > { %p555_p10 = pneg %p554_p9  ;;  %s558_s9 = scalar_lea.vmem %s557_s7, 256 }
  0x23   : > { %p559_p11 = scmp.lt.s32.totalorder %s193_s15, %s557_s7  ;;  %p560_p12 = scmp.lt.s32.totalorder %s558_s9, %s551_s27 }
  0x25   : > { %p561_p13 = por %p560_p12, %p559_p11 }
  0x27   : > { %p562_p0 = pnand %p561_p13, %p555_p10 }
  0x29   : > { %565 = shalt.err (!%p562_p0)
}
  0x2a   : > { %442 = dma.hbm_to_vmem [thread:$0]  (!%p852_p6), %s190_s13, 128, %s193_s15, %s856_s17  }
  0x2b   : > { %s864_s29 = sadd.s32 4294967295, %s734_s25   ;;  %s406_s6 = sadd.s32 4294967294, %s734_s25  }
  0x2c   : > { %p85_p3 = scmp.ne.s32.totalorder %s718_s22, %s714_s21  ;;  %p1040_p4 = scmp.eq.s32.totalorder %s864_s29, 0 }
  0x2d   : > { %p115_p7 = scmp.ne.s32.totalorder %s706_s19, %s702_s18  ;;  %p141_p8 = scmp.eq.s32.totalorder %s864_s29, 15 }
  0x2e   : > { %p147_p9 = scmp.eq.s32.totalorder %s406_s6, 15  ;;  %p875_p6 = por %p1040_p4, %p85_p3 }
  0x2f   : > { %p881_p10 = por %p115_p7, %p1040_p4  ;;  %p888_p11 = por %p141_p8, %p79_p1 }
  0x30   : > { %s1056_s10 = scalar_select %p875_p6, 1, 0 }
  0x31   : > { %s1057_s11 = scalar_select %p881_p10, 1, 0 }
  0x32   : > { %s1058_s12 = scalar_select %p888_p11, 1, 0 }
  0x33   : > { %p892_p12 = por %p147_p9, %p85_p3  ;;  %p407_p13 = scmp.ge.s32.totalorder %s734_s25, 1 }
  0x34   : > { %p154_p0 = scmp.lt.s32.totalorder %s734_s25, 17  ;;  %s738_s14 = smov [#allocation4]  }
  0x35   : > { %s1059_s18 = scalar_select %p892_p12, 1, 0 }
  0x36   : > { %p898_p5 = pnand %p407_p13, %p154_p0  ;;  %s169_s15 = sshll.u32 %s738_s14, 4  ;;  %s170_s15 = int_to_ptr.vmem [resolvable:$true] %s169_s15 }
  0x37   : > { %s97_s16 = ssub.s32 %s820_s28, %s836_s5  ;;  %s102_s7 = sadd.s32 1, %s710_s20 }
  0x38   : > { %s1060_s13 = scalar_select %p898_p5, 1, 0 }
  0x39   : > { %p435_p7 = pneg %p898_p5  ;;  %p912_p3 = scmp.eq.s32.totalorder %s97_s16, 0 }
  0x3a   : > { %p109_p8 = scmp.ne.s32.totalorder %s710_s20, %s706_s19  ;;  %s201_s9 = sand.u32 1, %s710_s20  }
  0x3b   : > { %p908_p1 = pnand %p435_p7, %p1040_p4  ;;  %s577_s6 = scalar_lea.vmem %s170_s15, 128 }
  0x3c   : > { %p578_p13 = scmp.ne.s32.totalorder %s170_s15, %s577_s6  ;;  %p585_p12 = scmp.lt.s32.totalorder %s170_s15, %s170_s15 }
  0x3d   : > { %p568_p9 = pneg %p908_p1  ;;  %p586_p11 = scmp.lt.s32.totalorder %s577_s6, %s577_s6 }
  0x3f   : > { %p580_p0 = pnand %p578_p13, %p568_p9  ;;  %p587_p7 = por %p586_p11, %p585_p12 }
  0x41   : > { %p581_p2 = pneg %p580_p0 }
  0x43   : > { %p588_p4 = pnand %p587_p7, %p581_p2 }
  0x45   : > { %591 = shalt.err (!%p588_p4)
}
  0x46   : > { %s1063_s1 = sld [smem:[#allocation23_spill]]  ;;  %p1065_p2 = scmp.eq.s32.totalorder %s734_s25, 0 }
  0x47   : > { %s930_s14 = scalar_select %p912_p3, %s710_s20, %s102_s7  }
  0x48   : > { %p111_p4 = por %p109_p8, %p1065_p2  ;;  %s412_s16 = sshll.u32 %s201_s9, 3 }
  0x49   : > { %1064 = sst [smem:[#allocation22_spill]] %s930_s14  ;;  %p1066_p11 = scmp.lt.s32.totalorder %s734_s25, 16 }
  0x4a   : > { %s426_s27 = scalar_select %p111_p4, [#allocation3], [#allocation11] }
  0x4b   : > { %s427_s6 = scalar_select %p111_p4, %s730_s24, 0 }
  0x4c   : > { %438 = dma.hbm_to_vmem [thread:$0]  (!%p908_p1), %s1063_s1, 128, %s170_s15, [#allocation5]  }
  0x4d   : > { %s1090_s27 = smov (!%p1066_p11, %s426_s27), [#allocation12]  ;;  %p1067_p12 = pmov %p1066_p11 }
  0x4e   : > { %p1068_p9 = pmov %p1066_p11  ;;  %s203_s30 = scalar_lea.vmem [#allocation9], %s412_s16 }
  0x4f   : > { %s1092_s6 = smov (!%p1067_p12, %s427_s6), 0  ;;  %s212_s7 = sshll.u32 %s203_s30, 4  ;;  %s213_s7 = int_to_ptr.vmem [resolvable:$true] %s212_s7 }
  0x50   : > { %p944_p13 = pnand %p1068_p9, %p111_p4  ;;  %s204_s15 = sld [smem:[%s1090_s27 + %s1092_s6]] }
  0x51   : > { %s597_s23 = scalar_lea.hbm %s1035_s3, 2048 }
  0x52   : > { %p594_p3 = pneg %p944_p13 }
  0x56   : > { %s413_s5 = sshll.u32 %s204_s15, 7 }
  0x57   : > { %s210_s9 = scalar_lea.hbm %s1035_s3, %s413_s5 }
  0x58   : > { %s592_s26 = scalar_lea.hbm %s210_s9, 128  ;;  %p598_p7 = scmp.lt.s32.totalorder %s210_s9, %s1035_s3 }
  0x59   : > { %p593_p1 = scmp.ne.s32.totalorder %s210_s9, %s592_s26  ;;  %p599_p2 = scmp.lt.s32.totalorder %s597_s23, %s592_s26 }
  0x5b   : > { %p595_p8 = pnand %p594_p3, %p593_p1  ;;  %p600_p4 = por %p599_p2, %p598_p7 }
  0x5d   : > { %p596_p0 = pneg %p595_p8 }
  0x5f   : > { %p601_p11 = pnand %p600_p4, %p596_p0 }
  0x61   : > { %604 = shalt.err (!%p601_p11)
}
  0x62   : > { %s605_s1 = scalar_lea.vmem %s213_s7, 128  ;;  %s739_s2 = smov [#allocation9]  }
  0x63   : > { %p606_p12 = scmp.ne.s32.totalorder %s213_s7, %s605_s1  ;;  %s610_s16 = sshll.u32 %s739_s2, 4  ;;  %s611_s16 = int_to_ptr.vmem [resolvable:$false] %s610_s16 }
  0x64   : > { %s612_s6 = scalar_lea.vmem %s611_s16, 256  ;;  %p613_p1 = scmp.lt.s32.totalorder %s213_s7, %s611_s16 }
  0x65   : > { %p608_p9 = pnand %p606_p12, %p594_p3  ;;  %p614_p8 = scmp.lt.s32.totalorder %s612_s6, %s605_s1 }
  0x67   : > { %p609_p10 = pneg %p608_p9  ;;  %p615_p6 = por %p614_p8, %p613_p1 }
  0x69   : > { %p616_p5 = pnand %p615_p6, %p609_p10 }
  0x6b   : > { %619 = shalt.err (!%p616_p5)
}
  0x6c   : > { %447 = dma.hbm_to_vmem [thread:$0]  (!%p944_p13), %s210_s9, 128, %s213_s7, %s856_s17  }
  0x6d   : > { %p1070_p0 = scmp.ne.s32.totalorder %s1060_s13, 0 }
  0x6e   : > { %p1071_p7 = scmp.eq.s32.totalorder (!%p1070_p0), %s864_s29, 0 }
  0x6f   : > { %221 = sbr.rel (%p1070_p0) target bundleno = 151 (0x97), region = 32 }
  0x74   : > { %685 = dma.done.wait (%p1071_p7), [#allocation5], 128   ;;  %p1072_p3 = pmov %p1071_p7 }
  0x75   : > { %s227_s23 = sand.u32 1, %s864_s29   ;;  %s229_s24 = sand.u32 1, %s718_s22  }
  0x76   : > { %687 = vsyncadd (%p1072_p3), [#allocation5], 4294967168  ;;  %s416_s26 = sshll.u32 %s229_s24, 3  ;;  %s228_s8 = scalar_lea.sflag [#allocation8], %s227_s23 }
  0x77   : > { %s231_s14 = scalar_lea.vmem [#allocation7], %s416_s26  ;;  %p1073_p5 = scmp.ne.s32.totalorder %s1056_s10, 0 }
  0x79   : > { %689 = dma.done.wait (%p1073_p5), %s228_s8, 128  }
  0x7a   : > { %691 = vsyncadd (%p1073_p5), %s228_s8, 4294967168  ;;  %s238_s17 = sand.u32 1, %s706_s19   ;;  %p1074_p6 = scmp.ne.s32.totalorder %s1057_s11, 0 }
  0x7b   : > { %s417_s13 = sshll.u32 %s238_s17, 3 }
  0x7c   : > { %s240_s28 = scalar_lea.vmem [#allocation9], %s417_s13 }
  0x7d   : > { %693 = dma.done.wait (%p1074_p6), %s228_s8, 128  }
  0x7e   : > { %695 = vsyncadd (%p1074_p6), %s228_s8, 4294967168  ;;  %s267_s29 = scalar_lea.vmem [#allocation10], %s416_s26  ;;  %s420_s30 = sshll.u32 %s726_s0, 7  ;;  %v269_v0 = vld [vmem:[#allocation4] sm:$0xff]  ;;  %v272_v2 = vld [vmem:[%s231_s14] sm:$0xff] }
  0x7f   : > { %s290_s15 = sshll.u32 %s267_s29, 4  ;;  %v271_v1 = vld [vmem:[%s240_s28] sm:$0xff]  ;;  %vm270_vm0 = vcmp.ne.s32.totalorder %v269_v0, 0  ;;  %s288_s5 = scalar_lea.hbm %s1036_s4, %s420_s30  ;;  %s980_s15 = int_to_ptr.vmem [resolvable:$true] %s290_s15 }
  0x80   : > { %v273_v3 = vsel %vm270_vm0, %v271_v1, %v272_v2  ;;  %s276_s11 = scalar_lea.sflag [#allocation6], %s229_s24  ;;  %s620_s9 = scalar_lea.vmem %s980_s15, 128 }
  0x81   : > { %274 = vst [vmem:[%s267_s29] sm:$0xff] %v273_v3  ;;  %p621_p10 = scmp.ne.s32.totalorder %s980_s15, %s620_s9  ;;  %p1075_p13 = scmp.ne.s32.totalorder %s1058_s12, 0 }
  0x82   : > { %s740_s0 = smov [#allocation10]  }
  0x83   : > { %p622_p2 = pnand %p621_p10, %p1075_p13  ;;  %s624_s27 = sshll.u32 %s740_s0, 4  ;;  %s625_s27 = int_to_ptr.vmem [resolvable:$false] %s624_s27 }
  0x84   : > { %s626_s1 = scalar_lea.vmem %s625_s27, 256  ;;  %p627_p11 = scmp.lt.s32.totalorder %s980_s15, %s625_s27 }
  0x85   : > { %p623_p4 = pneg %p622_p2  ;;  %p628_p12 = scmp.lt.s32.totalorder %s626_s1, %s620_s9 }
  0x87   : > { %p629_p9 = por %p628_p12, %p627_p11 }
  0x89   : > { %p630_p1 = pnand %p629_p9, %p623_p4 }
  0x8b   : > { %633 = shalt.err (!%p630_p1)
}
  0x8c   : > { %s634_s2 = scalar_lea.hbm %s288_s5, 128  ;;  %s638_s23 = scalar_lea.hbm %s1036_s4, 2048 }
  0x8d   : > { %p635_p8 = scmp.ne.s32.totalorder %s288_s5, %s634_s2  ;;  %p639_p3 = scmp.lt.s32.totalorder %s288_s5, %s1036_s4 }
  0x8e   : > { %p640_p5 = scmp.lt.s32.totalorder %s638_s23, %s634_s2 }
  0x8f   : > { %p636_p0 = pnand %p635_p8, %p1075_p13 }
  0x90   : > { %p641_p6 = por %p640_p5, %p639_p3 }
  0x91   : > { %p637_p7 = pneg %p636_p0 }
  0x93   : > { %p642_p10 = pnand %p641_p6, %p637_p7 }
  0x95   : > { %645 = shalt.err (!%p642_p10)
}
  0x96   : > { %433 = dma.vmem_to_hbm [thread:$0]  (%p1075_p13), %s980_s15, 128, %s288_s5, %s276_s11  }
  0x97 PF: > { %p455_p2 = scmp.ge.s32.totalorder %s734_s25, 2  ;;  %s302_s8 = sand.u32 1, %s714_s21  }
  0x98   : > { %p1076_p4 = scmp.ne.s32.totalorder %s1059_s18, 0  ;;  %s303_s14 = scalar_lea.sflag [#allocation6], %s302_s8 }
  0x9a   : > { %p449_p11 = pnand %p455_p2, %p1076_p4 }
  0x9c   : > { %p450_p12 = pneg %p449_p11 }
  0x9e   : > { %697 = dma.done.wait (%p450_p12), %s303_s14, 128  }
  0x9f   : > { %699 = vsyncadd (%p450_p12), %s303_s14, 4294967168  ;;  %s25_s25 = sadd.s32 1, %s734_s25   ;;  %s1077_s12 = sld [smem:[#allocation22_spill]] }
  0xa0   : > { %p22_p9 = scmp.ge.s32.totalorder %s25_s25, 18   ;;  %s1078_s17 = sld [smem:[#allocation18_spill]] }
  0xa1   : > { %s1079_s23 = sld [smem:[#allocation21_spill]]  ;;  %s1082_s18 = smov %s706_s19 }
  0xa2   : > { %s1080_s0 = sld [smem:[#allocation19_spill]]  ;;  %s1083_s19 = smov %s710_s20 }
  0xa3   : > { %s1081_s24 = sld [smem:[#allocation20_spill]]  ;;  %s1085_s21 = smov %s718_s22 }
  0xa4   :  { %24 = sbr.rel (!%p22_p9) target bundleno = 16 (0x10), region = 94 }
  0xa5   : > { %s1084_s20 = smov %s1077_s12 }
  0xa6   : > { %s1086_s22 = smov %s1078_s17 }
  0xa9   :  { %308 = vsyncpa [#allocation5], 1 }
  0xaa   :  { %310 = vsyncpa [#allocation5 + $0x1], 1 }
  0xab   :  { %311 = vsyncpa [#allocation8], 1 }
  0xac   :  { %313 = vsyncpa [#allocation8 + $0x1], 1 }
  0xad   :  { %314 = vsyncpa [#allocation6], 1 }
  0xae   :  { %316 = vsyncpa [#allocation6 + $0x1], 1 }

</bundles_post_ra>
